<compile_context>
chip_gen: v7x
topology: tpu7x:2x2x1
jax: 0.10.0
libtpu: 0.0.40
codegen_flags: <defaults>
</compile_context>

<pallas_src>
import jax
import jax.numpy as jnp
from jax.experimental import pallas as pl
from jax.experimental.pallas import tpu as pltpu

OBS_DIM = 4        # env.observation_space.shape[0] for CartPole-v0
N_ACT = 2          # env.action_space.n for CartPole-v0
HIDDEN = 64
OUT_PAD = 8        # fc2 output rows padded to one f32 sublane group

LANE = 128         # TPU lane width (last-dim vreg extent)
BATCH_TILE = 2048  # batch columns per grid step (sweet spot 2048-4096)
SPLIT_THRESHOLD = 1024  # above this, force >=2 grid blocks (v7x: 2 TensorCores)


def _round_up(n, m):
    return ((n + m - 1) // m) * m


def dqn_kernel(xt_ref, w1t_ref, b1t_ref, w2t_ref, b2t_ref, o_ref):
    """Batch-on-lanes fused MLP:  o = W2^T tanh(W1^T x + b1) + b2."""
    xt = xt_ref[...]            # (OBS_DIM, tb)   batch on lanes
    w1t = w1t_ref[...]          # (HIDDEN, OBS_DIM)

    # fc1 as OBS_DIM rank-1 VPU FMAs (bias is the accumulator init). K=4 on
    # the MXU would be >95% idle, so keep it on the VPU with full vregs:
    # hidden on sublanes, batch on lanes.
    h = w1t[:, 0:1] * xt[0:1, :] + b1t_ref[...]            # (HIDDEN, tb)
    for k in range(1, OBS_DIM):                            # static unroll, K=4
        h = h + w1t[:, k:k + 1] * xt[k:k + 1, :]
    h = jnp.tanh(h)                                        # EUP, full vregs

    # fc2: one small MXU matmul (OUT_PAD, HIDDEN) @ (HIDDEN, tb).
    y = jnp.dot(w2t_ref[...], h, preferred_element_type=jnp.float32)
    y = y + b2t_ref[...]                                   # (OUT_PAD, tb)

    # Store only the real action rows -> tiny HBM writeback (2 rows, not 128
    # zero-padded lanes per batch row as before).
    o_ref[...] = y[:N_ACT, :].astype(o_ref.dtype)


def prepare_params(w1, b1, w2, b2):
    """One-time layout prep, hoisted out of the per-step forward.

    Inputs follow the wrapper convention: w1 (OBS_DIM, HIDDEN), b1 (HIDDEN,),
    w2 (HIDDEN, N_ACT), b2 (N_ACT,)  [i.e. y = tanh(x@w1+b1) @ w2 + b2].
    """
    w1t = jnp.asarray(w1).T                                        # (HIDDEN, OBS_DIM)
    b1t = jnp.asarray(b1).reshape(HIDDEN, 1)                       # (HIDDEN, 1)
    w2t = jnp.pad(jnp.asarray(w2).T, ((0, OUT_PAD - N_ACT), (0, 0)))   # (8, HIDDEN)
    b2t = jnp.pad(jnp.asarray(b2).reshape(N_ACT, 1),
                  ((0, OUT_PAD - N_ACT), (0, 0)))                  # (8, 1)
    return w1t, b1t, w2t, b2t


def dqn_forward(x, prepped_params):
    """y = fc2(tanh(fc1(x))), returned as (B, N_ACT) float32."""
    w1t, b1t, w2t, b2t = prepped_params
    B = x.shape[0]

    # Batch sits on lanes: pad to a lane multiple so every vreg is full.
    Bp = _round_up(B, LANE)

    # Always-tiled batch split: pad Bp up to a multiple of the tile so there is
    # no "single giant block" fallback (VMEM-safe on v7x), and force >=2 blocks
    # for large batches so both v7x TensorCores get half the work.
    if Bp <= SPLIT_THRESHOLD:
        tb = Bp
        n_tiles = 1
    else:
        n_tiles = max(2, -(-Bp // BATCH_TILE))          # cdiv
        tb = _round_up(-(-Bp // n_tiles), LANE)         # cdiv, lane-aligned
        Bp = tb * n_tiles

    # Cheap XLA-side transpose + zero pad of the tiny (B, 4) input.
    xt = jnp.pad(x.T, ((0, 0), (0, Bp - B)))            # (OBS_DIM, Bp)

    out = pl.pallas_call(
        dqn_kernel,
        out_shape=jax.ShapeDtypeStruct((N_ACT, Bp), jnp.float32),
        grid=(n_tiles,),
        in_specs=[
            pl.BlockSpec((OBS_DIM, tb), lambda i: (0, i)),       # x^T tile
            pl.BlockSpec((HIDDEN, OBS_DIM), lambda i: (0, 0)),   # w1^T (whole)
            pl.BlockSpec((HIDDEN, 1), lambda i: (0, 0)),         # b1
            pl.BlockSpec((OUT_PAD, HIDDEN), lambda i: (0, 0)),   # w2^T padded
            pl.BlockSpec((OUT_PAD, 1), lambda i: (0, 0)),        # b2 padded
        ],
        out_specs=pl.BlockSpec((N_ACT, tb), lambda i: (0, i)),
        compiler_params=pltpu.CompilerParams(
            dimension_semantics=("parallel",)),
    )(xt, w1t, b1t, w2t, b2t)

    # Back to the reference (B, N_ACT) orientation; trivial (2 x B) slice+T.
    return out[:, :B].T


def init_params(key):
    """Deterministic init mimicking torch.nn.Linear default U[-1/sqrt(fan_in), +]."""
    k1, k2, k3, k4 = jax.random.split(key, 4)
    bound1 = 1.0 / jnp.sqrt(OBS_DIM)
    bound2 = 1.0 / jnp.sqrt(HIDDEN)
    w1 = jax.random.uniform(k1, (OBS_DIM, HIDDEN), jnp.float32, -bound1, bound1)
    b1 = jax.random.uniform(k2, (HIDDEN,), jnp.float32, -bound1, bound1)
    w2 = jax.random.uniform(k3, (HIDDEN, N_ACT), jnp.float32, -bound2, bound2)
    b2 = jax.random.uniform(k4, (N_ACT,), jnp.float32, -bound2, bound2)
    return w1, b1, w2, b2


if __name__ == "__main__":
    key = jax.random.PRNGKey(0)
    k_params, k_x = jax.random.split(key)

    w1, b1, w2, b2 = init_params(k_params)
    prepped = prepare_params(w1, b1, w2, b2)   # hoisted out of the step loop

    # Small deterministic batches: sublane-aligned (8), odd (3) to exercise the
    # batch-padding path, and 260 to exercise multi-vreg lane padding.
    for batch in (8, 3, 260):
        x = jax.random.normal(jax.random.fold_in(k_x, batch),
                              (batch, OBS_DIM), jnp.float32)
        out = jax.block_until_ready(dqn_forward(x, prepped))

        # Pure-JAX reference check of the fused kernel.
        ref = jnp.tanh(x @ w1 + b1[None, :]) @ w2 + b2[None, :]
        assert out.shape == (batch, N_ACT)
        assert jnp.allclose(out, ref, atol=2e-5, rtol=1e-5)

    print("KERNEL_OK")
</pallas_src>

<mosaic_0001>
module attributes {stable_mosaic.version = 11 : i64} {
  func.func @dqn_kernel(%arg0: i32, %arg1: memref<4x128xf32, #tpu.memory_space<vmem>>, %arg2: memref<64x4xf32, #tpu.memory_space<vmem>>, %arg3: memref<64x1xf32, #tpu.memory_space<vmem>>, %arg4: memref<8x64xf32, #tpu.memory_space<vmem>>, %arg5: memref<8x1xf32, #tpu.memory_space<vmem>>, %arg6: memref<2x128xf32, #tpu.memory_space<vmem>>) attributes {dimension_semantics = [#tpu.dimension_semantics<parallel>], iteration_bounds = array<i64: 1>, scalar_prefetch = 0 : i64, scratch_operands = 0 : i64, tpu.core_type = #tpu.core_type<tc>, window_params = [{transform_indices = @transform_0, window_bounds = array<i64: 4, 128>}, {pipeline_mode = #tpu.pipeline_mode<synchronous>, transform_indices = @transform_1, window_bounds = array<i64: 64, 4>}, {pipeline_mode = #tpu.pipeline_mode<synchronous>, transform_indices = @transform_2, window_bounds = array<i64: 64, 1>}, {pipeline_mode = #tpu.pipeline_mode<synchronous>, transform_indices = @transform_3, window_bounds = array<i64: 8, 64>}, {pipeline_mode = #tpu.pipeline_mode<synchronous>, transform_indices = @transform_4, window_bounds = array<i64: 8, 1>}, {transform_indices = @transform_5, window_bounds = array<i64: 2, 128>}]} {
    %c0 = arith.constant 0 : index
    %c0_0 = arith.constant 0 : index
    %0 = vector.load %arg1[%c0, %c0_0] : memref<4x128xf32, #tpu.memory_space<vmem>>, vector<4x128xf32>
    %c0_1 = arith.constant 0 : index
    %c0_2 = arith.constant 0 : index
    %1 = vector.load %arg2[%c0_1, %c0_2] : memref<64x4xf32, #tpu.memory_space<vmem>>, vector<64x4xf32>
    %2 = vector.extract_strided_slice %1 {offsets = [0, 0], sizes = [64, 1], strides = [1, 1]} : vector<64x4xf32> to vector<64x1xf32>
    %3 = vector.extract_strided_slice %0 {offsets = [0, 0], sizes = [1, 128], strides = [1, 1]} : vector<4x128xf32> to vector<1x128xf32>
    %4 = vector.broadcast %2 : vector<64x1xf32> to vector<64x128xf32>
    %5 = vector.broadcast %3 : vector<1x128xf32> to vector<64x128xf32>
    %6 = arith.mulf %4, %5 : vector<64x128xf32>
    %c0_3 = arith.constant 0 : index
    %c0_4 = arith.constant 0 : index
    %7 = vector.load %arg3[%c0_3, %c0_4] : memref<64x1xf32, #tpu.memory_space<vmem>>, vector<64x1xf32>
    %8 = vector.broadcast %7 : vector<64x1xf32> to vector<64x128xf32>
    %9 = arith.addf %6, %8 : vector<64x128xf32>
    %10 = vector.extract_strided_slice %1 {offsets = [0, 1], sizes = [64, 1], strides = [1, 1]} : vector<64x4xf32> to vector<64x1xf32>
    %11 = vector.extract_strided_slice %0 {offsets = [1, 0], sizes = [1, 128], strides = [1, 1]} : vector<4x128xf32> to vector<1x128xf32>
    %12 = vector.broadcast %10 : vector<64x1xf32> to vector<64x128xf32>
    %13 = vector.broadcast %11 : vector<1x128xf32> to vector<64x128xf32>
    %14 = arith.mulf %12, %13 : vector<64x128xf32>
    %15 = arith.addf %9, %14 : vector<64x128xf32>
    %16 = vector.extract_strided_slice %1 {offsets = [0, 2], sizes = [64, 1], strides = [1, 1]} : vector<64x4xf32> to vector<64x1xf32>
    %17 = vector.extract_strided_slice %0 {offsets = [2, 0], sizes = [1, 128], strides = [1, 1]} : vector<4x128xf32> to vector<1x128xf32>
    %18 = vector.broadcast %16 : vector<64x1xf32> to vector<64x128xf32>
    %19 = vector.broadcast %17 : vector<1x128xf32> to vector<64x128xf32>
    %20 = arith.mulf %18, %19 : vector<64x128xf32>
    %21 = arith.addf %15, %20 : vector<64x128xf32>
    %22 = vector.extract_strided_slice %1 {offsets = [0, 3], sizes = [64, 1], strides = [1, 1]} : vector<64x4xf32> to vector<64x1xf32>
    %23 = vector.extract_strided_slice %0 {offsets = [3, 0], sizes = [1, 128], strides = [1, 1]} : vector<4x128xf32> to vector<1x128xf32>
    %24 = vector.broadcast %22 : vector<64x1xf32> to vector<64x128xf32>
    %25 = vector.broadcast %23 : vector<1x128xf32> to vector<64x128xf32>
    %26 = arith.mulf %24, %25 : vector<64x128xf32>
    %27 = arith.addf %21, %26 : vector<64x128xf32>
    %28 = math.tanh %27 : vector<64x128xf32>
    %c0_5 = arith.constant 0 : index
    %c0_6 = arith.constant 0 : index
    %29 = vector.load %arg4[%c0_5, %c0_6] : memref<8x64xf32, #tpu.memory_space<vmem>>, vector<8x64xf32>
    %cst = arith.constant dense<0.000000e+00> : vector<8x128xf32>
    %30 = tpu.matmul %29, %28, %cst {dimension_numbers = #tpu.dot_dimension_numbers<[1], [0], [0], [1], [0, 0, 1, 1], [], []>} : vector<8x64xf32>, vector<64x128xf32>, vector<8x128xf32> -> vector<8x128xf32>
    %c0_7 = arith.constant 0 : index
    %c0_8 = arith.constant 0 : index
    %31 = vector.load %arg5[%c0_7, %c0_8] : memref<8x1xf32, #tpu.memory_space<vmem>>, vector<8x1xf32>
    %32 = vector.broadcast %31 : vector<8x1xf32> to vector<8x128xf32>
    %33 = arith.addf %30, %32 : vector<8x128xf32>
    %34 = vector.extract_strided_slice %33 {offsets = [0, 0], sizes = [2, 128], strides = [1, 1]} : vector<8x128xf32> to vector<2x128xf32>
    %c0_9 = arith.constant 0 : index
    %c0_10 = arith.constant 0 : index
    %35 = vector.load %arg6[%c0_9, %c0_10] : memref<2x128xf32, #tpu.memory_space<vmem>>, vector<2x128xf32>
    tpu.vector_store %arg6[%c0_9, %c0_10], %34 {strides = array<i32>} : memref<2x128xf32, #tpu.memory_space<vmem>>, vector<2x128xf32>,
    return
  }
  func.func @transform_0(%arg0: i32) -> (i32, i32) {
    %c0_i32 = arith.constant 0 : i32
    %c0_i32_0 = arith.constant 0 : i32
    return %c0_i32, %arg0 : i32, i32
  }
  func.func @transform_1(%arg0: i32) -> (i32, i32) {
    %c0_i32 = arith.constant 0 : i32
    %c0_i32_0 = arith.constant 0 : i32
    %c0_i32_1 = arith.constant 0 : i32
    return %c0_i32, %c0_i32_0 : i32, i32
  }
  func.func @transform_2(%arg0: i32) -> (i32, i32) {
    %c0_i32 = arith.constant 0 : i32
    %c0_i32_0 = arith.constant 0 : i32
    %c0_i32_1 = arith.constant 0 : i32
    return %c0_i32, %c0_i32_0 : i32, i32
  }
  func.func @transform_3(%arg0: i32) -> (i32, i32) {
    %c0_i32 = arith.constant 0 : i32
    %c0_i32_0 = arith.constant 0 : i32
    %c0_i32_1 = arith.constant 0 : i32
    return %c0_i32, %c0_i32_0 : i32, i32
  }
  func.func @transform_4(%arg0: i32) -> (i32, i32) {
    %c0_i32 = arith.constant 0 : i32
    %c0_i32_0 = arith.constant 0 : i32
    %c0_i32_1 = arith.constant 0 : i32
    return %c0_i32, %c0_i32_0 : i32, i32
  }
  func.func @transform_5(%arg0: i32) -> (i32, i32) {
    %c0_i32 = arith.constant 0 : i32
    %c0_i32_0 = arith.constant 0 : i32
    return %c0_i32, %arg0 : i32, i32
  }
}

</mosaic_0001>

<bundles_post_ra>
// kernel: tpu_custom_call.1
= control target key start
LH: loop header
LB: loop body
LE: loop exit
PB: predicated region body
PF: predicated region fallthrough
CT: control target
= control target key end

     0   :  { %v511_v2 = vmov 2   ;;  %v512_v3 = vmov 0   ;;  %s688_s0 = inlined_call_operand.vmem [shape: f32[4,128], index: 0, kind: input, shape index: {}]   ;;  %s689_s1 = inlined_call_operand.vmem [shape: f32[64,4], index: 1, kind: input, shape index: {}]   ;;  %s690_s2 = inlined_call_operand.vmem [shape: f32[64,1], index: 2, kind: input, shape index: {}]   ;;  %s691_s3 = inlined_call_operand.vmem [shape: f32[8,64], index: 3, kind: input, shape index: {}]   ;;  %s692_s4 = inlined_call_operand.vmem [shape: f32[8,1], index: 4, kind: input, shape index: {}]   ;;  %s693_s5 = inlined_call_operand.hbm [shape: f32[2,128], index: 5, kind: output, shape index: {}]  }
   0x1   :  { %v82_v0 = vld [vmem:[%s690_s2] sm:$0xff]  ;;  %v24_v1 = vld [vmem:[%s689_s1 + $0x10] sm:$0xff]  ;;  %455 = vset.pattern.permute.xlu0 %v511_v2  ;;  %447 = vset.pattern.permute.xlu1 %v512_v3  ;;  %v83_v4 = vld [vmem:[%s690_s2 + $0x8] sm:$0xff] }
   0x2   :  { %92 = vperm.xlu1 %447, %v82_v0   ;;  %199 = vperm.xlu0 %455, %v24_v1   ;;  %v22_v5 = vld [vmem:[%s689_s1] sm:$0xff] }
   0x3   :  { %10 = vsyncpa [#allocation3], 0  ;;  %v23_v6 = vld [vmem:[%s689_s1 + $0x8] sm:$0xff]  ;;  %v513_v7 = vmov 1   ;;  %v25_v8 = vld [vmem:[%s689_s1 + $0x18] sm:$0xff]  ;;  %v514_v14 = vmov 3   ;;  %v70_v31 = vlaneseq }
   0x4   :  { %v84_v9 = vld [vmem:[%s690_s2 + $0x10] sm:$0xff]  ;;  %v87_v10 = vld [vmem:[%s690_s2 + $0x28] sm:$0xff]  ;;  %v29_v11 = vld [vmem:[%s689_s1 + $0x38] sm:$0xff]  ;;  %v515_v19 = vmov 0.0|0.0   ;;  %vm516_vm0 = vmmov 0   ;;  %v517_v25 = vmov 0.0  }
   0x5   :  { %v85_v12 = vld [vmem:[%s690_s2 + $0x18] sm:$0xff]  ;;  %v88_v13 = vld [vmem:[%s690_s2 + $0x30] sm:$0xff]  ;;  %v26_v16 = vld [vmem:[%s689_s1 + $0x20] sm:$0xff]  ;;  %427 = vmatprep.subr.bf16.mxu0 %v515_v19  ;;  %424 = vmatprep.mubr.msk.f32.mxu0 %vm516_vm0, %v517_v25  ;;  %v71_v34 = vshrl.u32 %v70_v31, 7  ;;  %vm309_vm1 = vcmask 523264   ;;  %s518_s27 = smov [#allocation2]  }
   0x6   :  { %97 = vperm.xlu1 %447, %v83_v4   ;;  %456 = vset.pattern.permute.xlu0 %v512_v3  ;;  %v28_v15 = vld [vmem:[%s689_s1 + $0x30] sm:$0xff]  ;;  %v27_v17 = vld [vmem:[%s689_s1 + $0x28] sm:$0xff]  ;;  %v86_v18 = vld [vmem:[%s690_s2 + $0x20] sm:$0xff]  ;;  %s390_s28 = sshll.u32 %s518_s27, 4  ;;  %s391_s28 = int_to_ptr.vmem [resolvable:$true] %s390_s28 }
   0x7   :  { %32 = vperm.xlu0 %456, %v22_v5   ;;  %v89_v20 = vld [vmem:[%s690_s2 + $0x38] sm:$0xff]  ;;  %v303_v26 = vld [vmem:[%s692_s4] sm:$0xff]  ;;  %v72_v37 = vsub.s32 0, %v71_v34  ;;  %v172_v42 = vsub.s32 1, %v71_v34  ;;  %v224_v44 = vsub.s32 2, %v71_v34  ;;  %v276_v50 = vsub.s32 3, %v71_v34  ;;  %p492_p1 = scmp.lt.s32.totalorder %s391_s28, %s391_s28 }
   0x8   :  { %v21_v39 = vld [vmem:[%s688_s0] sm:$0xf]  ;;  %s487_s29 = scalar_lea.vmem %s391_s28, 32 }
   0x9   :  { %v624_v41 = vrot.slane %v21_v39, %v72_v37  ;;  %v629_v46 = vrot.slane %v21_v39, %v172_v42  ;;  %v632_v51 = vrot.slane %v21_v39, %v224_v44  ;;  %v635_v57 = vrot.slane %v21_v39, %v276_v50  ;;  %p488_p0 = scmp.ne.s32.totalorder %s391_s28, %s487_s29  ;;  %p493_p2 = scmp.lt.s32.totalorder %s487_s29, %s487_s29 }
   0xa   :  { %448 = vset.pattern.permute.xlu1 %v513_v7 }
   0xb   :  { %143 = vperm.xlu1 %448, %v23_v6   ;;  %37 = vperm.xlu0 %456, %v23_v6   ;;  %p494_p3 = por %p493_p2, %p492_p1 }
   0xd   :  { %p495_p4 = pnand %p494_p3, %p488_p0 }
   0xf   :  { %449 = vset.pattern.permute.xlu1 %v512_v3  ;;  %47 = vperm.xlu0 %456, %v25_v8  }
  0x10   :  { %42 = vperm.xlu1 %449, %v24_v1  }
  0x13   :  { %102 = vperm.xlu0 %456, %v84_v9  }
  0x14   :  { %450 = vset.pattern.permute.xlu1 %v511_v2 }
  0x15   :  { %191 = vperm.xlu1 %450, %v22_v5  }
  0x17   :  { %117 = vperm.xlu0 %456, %v87_v10  }
  0x19   :  { %195 = vperm.xlu1 %450, %v23_v6  }
  0x1b   :  { %67 = vperm.xlu0 %456, %v29_v11  }
  0x1d   :  { %451 = vset.pattern.permute.xlu1 %v512_v3 }
  0x1e   :  { %107 = vperm.xlu1 %451, %v85_v12  }
  0x1f   :  { %122 = vperm.xlu0 %456, %v88_v13  }
  0x22   :  { %452 = vset.pattern.permute.xlu1 %v513_v7 }
  0x23   :  { %463 = vset.pattern.permute.xlu0 %v513_v7  ;;  %151 = vperm.xlu1 %452, %v25_v8  }
  0x24   :  { %139 = vperm.xlu0 %463, %v22_v5  }
  0x27   :  { %453 = vset.pattern.permute.xlu1 %v514_v14 }
  0x28   :  { %147 = vperm.xlu0 %463, %v24_v1   ;;  %243 = vperm.xlu1 %453, %v22_v5  }
  0x2c   :  { %163 = vperm.xlu0 %463, %v28_v15   ;;  %454 = vset.pattern.permute.xlu1 %v512_v3 }
  0x2d   :  { %52 = vperm.xlu1 %454, %v26_v16  }
  0x30   :  { %465 = vset.pattern.permute.xlu0 %v514_v14 }
  0x31   :  { %247 = vperm.xlu0 %465, %v23_v6   ;;  %57 = vperm.xlu1 %454, %v27_v17  }
  0x35   :  { %251 = vperm.xlu0 %465, %v24_v1   ;;  %457 = vset.pattern.permute.xlu1 %v511_v2 }
  0x36   :  { %203 = vperm.xlu1 %457, %v25_v8  }
  0x39   :  { %263 = vperm.xlu0 %465, %v27_v17  }
  0x3a   :  { %458 = vset.pattern.permute.xlu1 %v512_v3 }
  0x3b   :  { %112 = vperm.xlu1 %458, %v86_v18  }
  0x3d   :  { %267 = vperm.xlu0 %465, %v28_v15  }
  0x3f   :  { %459 = vset.pattern.permute.xlu1 %v513_v7 }
  0x40   :  { %155 = vperm.xlu1 %459, %v26_v16  }
  0x41   :  { %470 = vset.pattern.permute.xlu0 %v512_v3 }
  0x42   :  { %306 = vperm.xlu0 %470, %v303_v26  }
  0x44   :  { %159 = vperm.xlu1 %459, %v27_v17  }
  0x48   :  { %460 = vset.pattern.permute.xlu1 %v514_v14 }
  0x49   :  { %255 = vperm.xlu1 %460, %v25_v8  }
  0x4d   :  { %461 = vset.pattern.permute.xlu1 %v512_v3 }
  0x4e   :  { %62 = vperm.xlu1 %461, %v28_v15  }
  0x52   :  { %462 = vset.pattern.permute.xlu1 %v511_v2 }
  0x53   :  { %207 = vperm.xlu1 %462, %v26_v16  }
  0x57   :  { %211 = vperm.xlu1 %462, %v27_v17  }
  0x5b   :  { %464 = vset.pattern.permute.xlu1 %v512_v3 }
  0x5c   :  { %127 = vperm.xlu1 %464, %v89_v20  }
  0x60   :  { %466 = vset.pattern.permute.xlu1 %v513_v7 }
  0x61   :  { %167 = vperm.xlu1 %466, %v29_v11  }
  0x65   :  { %467 = vset.pattern.permute.xlu1 %v514_v14 }
  0x66   :  { %259 = vperm.xlu1 %467, %v26_v16  }
  0x6a   :  { %468 = vset.pattern.permute.xlu1 %v511_v2 }
  0x6b   :  { %215 = vperm.xlu1 %468, %v28_v15  }
  0x6f   :  { %219 = vperm.xlu1 %468, %v29_v11  }
  0x73   :  { %469 = vset.pattern.permute.xlu1 %v514_v14 }
  0x74   :  { %271 = vperm.xlu1 %469, %v29_v11  }
  0x81   :  { %v93_v21 = vpop.permute.xlu1 %92  ;;  %v612_v22 = vpop.permute.xlu0 %199 }
  0x85   :  { %v98_v23 = vpop.permute.xlu1 %97 }
  0x86   :  { %v33_v24 = vpop.permute.xlu0 %32 }
  0x87   :  { %v74_v45 = vmul.f32 %v624_v41, %v33_v24 }
  0x89   :  { %v130_v52 = vadd.f32 %v93_v21, %v74_v45  ;;  %v228_v21 = vmul.f32 %v632_v51, %v612_v22 }
  0x8a   :  { %v144_v27 = vpop.permute.xlu1 %143  ;;  %v38_v28 = vpop.permute.xlu0 %37 }
  0x8b   :  { %v75_v53 = vmul.f32 %v624_v41, %v38_v28  ;;  %v175_v0 = vmul.f32 %v629_v46, %v144_v27 }
  0x8d   :  { %v131_v59 = vadd.f32 %v98_v23, %v75_v53 }
  0x8e   :  { %v48_v29 = vpop.permute.xlu0 %47 }
  0x8f   :  { %v43_v30 = vpop.permute.xlu1 %42  ;;  %v183_v2 = vadd.f32 %v175_v0, %v131_v59  ;;  %v77_v18 = vmul.f32 %v624_v41, %v48_v29 }
  0x90   :  { %v76_v11 = vmul.f32 %v624_v41, %v43_v30 }
  0x92   :  { %v103_v32 = vpop.permute.xlu0 %102 }
  0x93   :  { %v132_v16 = vadd.f32 %v103_v32, %v76_v11 }
  0x94   :  { %v192_v33 = vpop.permute.xlu1 %191 }
  0x95   :  { %v226_v58 = vmul.f32 %v632_v51, %v192_v33 }
  0x96   :  { %v617_v35 = vpop.permute.xlu0 %117 }
  0x98   :  { %v196_v36 = vpop.permute.xlu1 %195 }
  0x99   :  { %v227_v1 = vmul.f32 %v632_v51, %v196_v36 }
  0x9a   :  { %v619_v38 = vpop.permute.xlu0 %67 }
  0x9b   :  { %v235_v6 = vadd.f32 %v227_v1, %v183_v2 }
  0x9d   :  { %v108_v40 = vpop.permute.xlu1 %107 }
  0x9e   :  { %v626_v43 = vpop.permute.xlu0 %122  ;;  %v133_v27 = vadd.f32 %v108_v40, %v77_v18 }
  0xa2   :  { %v152_v47 = vpop.permute.xlu1 %151 }
  0xa3   :  { %v140_v48 = vpop.permute.xlu0 %139  ;;  %v177_v24 = vmul.f32 %v629_v46, %v152_v47 }
  0xa4   :  { %v174_v49 = vmul.f32 %v629_v46, %v140_v48 }
  0xa5   :  { %v185_v31 = vadd.f32 %v177_v24, %v133_v27 }
  0xa6   :  { %v182_v56 = vadd.f32 %v174_v49, %v130_v52 }
  0xa7   :  { %v148_v54 = vpop.permute.xlu0 %147  ;;  %v244_v55 = vpop.permute.xlu1 %243 }
  0xa8   :  { %v234_v61 = vadd.f32 %v226_v58, %v182_v56  ;;  %v278_v62 = vmul.f32 %v635_v57, %v244_v55  ;;  %v176_v13 = vmul.f32 %v629_v46, %v148_v54 }
  0xaa   :  { %v286_v3 = vadd.f32 %v278_v62, %v234_v61  ;;  %v184_v23 = vadd.f32 %v176_v13, %v132_v16 }
  0xab   :  { %v164_v60 = vpop.permute.xlu0 %163 }
  0xac   :  { %v53_v63 = vpop.permute.xlu1 %52  ;;  %471 = vtanh.f32 %v286_v3  ;;  %v236_v30 = vadd.f32 %v228_v21, %v184_v23  ;;  %v180_v37 = vmul.f32 %v629_v46, %v164_v60 }
  0xad   :  { %v78_v58 = vmul.f32 %v624_v41, %v53_v63 }
  0xb0   :  { %v248_v4 = vpop.permute.xlu0 %247  ;;  %v58_v5 = vpop.permute.xlu1 %57 }
  0xb1   :  { %v279_v7 = vmul.f32 %v635_v57, %v248_v4  ;;  %v79_v50 = vmul.f32 %v624_v41, %v58_v5 }
  0xb3   :  { %v287_v8 = vadd.f32 %v279_v7, %v235_v6  ;;  %v135_v54 = vadd.f32 %v617_v35, %v79_v50 }
  0xb4   :  { %v252_v20 = vpop.permute.xlu0 %251 }
  0xb5   :  { %473 = vtanh.f32 %v287_v8  ;;  %v204_v9 = vpop.permute.xlu1 %203  ;;  %v280_v26 = vmul.f32 %v635_v57, %v252_v20  ;;  %v81_v8 = vmul.f32 %v624_v41, %v619_v38 }
  0xb6   :  { %v472_v12 = vpop.eup %471  ;;  %v229_v28 = vmul.f32 %v632_v51, %v204_v9 }
  0xb7   :  { %v288_v32 = vadd.f32 %v280_v26, %v236_v30  ;;  %v302_v26 = vld [vmem:[%s691_s3] sm:$0xff] }
  0xb8   :  { %v237_v33 = vadd.f32 %v229_v28, %v185_v31  ;;  %v264_v56 = vpop.permute.xlu0 %263 }
  0xb9   :  { %475 = vtanh.f32 %v288_v32  ;;  %v283_v62 = vmul.f32 %v635_v57, %v264_v56 }
  0xba   :  { %v113_v10 = vpop.permute.xlu1 %112 }
  0xbb   :  { %v134_v0 = vadd.f32 %v113_v10, %v78_v58 }
  0xbc   :  { %v268_v10 = vpop.permute.xlu0 %267 }
  0xbf   :  { %v474_v14 = vpop.eup %473  ;;  %v156_v15 = vpop.permute.xlu1 %155 }
  0xc0   :  { %v428_v17 = vpack.c.bf16 %v474_v14, %v472_v12  ;;  %v178_v59 = vmul.f32 %v629_v46, %v156_v15  ;;  %v284_v15 = vmul.f32 %v635_v57, %v268_v10 }
  0xc1   :  { %v307_v27 = vpop.permute.xlu0 %306 }
  0xc2   :  { %429 = vmatpush3.bf16.msra.mxu0 %v428_v17  ;;  %v186_v2 = vadd.f32 %v178_v59, %v134_v0 }
  0xc3   :  { %v160_v25 = vpop.permute.xlu1 %159  ;;  %430 = vmatprep.subr.bf16.mxu0 %v515_v19  ;;  %v476_v45 = vpop.eup %475 }
  0xc4   :  { %v179_v52 = vmul.f32 %v629_v46, %v160_v25 }
  0xc8   :  { %v256_v29 = vpop.permute.xlu1 %255 }
  0xc9   :  { %v281_v34 = vmul.f32 %v635_v57, %v256_v29 }
  0xcb   :  { %v289_v22 = vadd.f32 %v281_v34, %v237_v33 }
  0xcd   :  { %477 = vtanh.f32 %v289_v22  ;;  %v63_v36 = vpop.permute.xlu1 %62 }
  0xce   :  { %v80_v39 = vmul.f32 %v624_v41, %v63_v36 }
  0xd0   :  { %v136_v42 = vadd.f32 %v626_v43, %v80_v39  ;;  %v187_v43 = vadd.f32 %v179_v52, %v135_v54 }
  0xd2   :  { %v208_v40 = vpop.permute.xlu1 %207  ;;  %v188_v44 = vadd.f32 %v180_v37, %v136_v42 }
  0xd3   :  { %v230_v1 = vmul.f32 %v632_v51, %v208_v40 }
  0xd5   :  { %v238_v5 = vadd.f32 %v230_v1, %v186_v2 }
  0xd6   :  { %v212_v47 = vpop.permute.xlu1 %211 }
  0xd7   :  { %v478_v48 = vpop.eup %477  ;;  %v231_v55 = vmul.f32 %v632_v51, %v212_v47 }
  0xd8   :  { %v431_v49 = vpack.c.bf16 %v478_v48, %v476_v45 }
  0xd9   :  { %v239_v61 = vadd.f32 %v231_v55, %v187_v43 }
  0xda   :  { %432 = vmatpush3.bf16.msra.mxu0 %v431_v49 }
  0xdb   :  { %v128_v53 = vpop.permute.xlu1 %127  ;;  %433 = vmatprep.subr.bf16.mxu0 %v515_v19  ;;  %v291_v3 = vadd.f32 %v283_v62, %v239_v61 }
  0xdc   :  { %v137_v13 = vadd.f32 %v128_v53, %v81_v8 }
  0xdd   :  { %479 = vtanh.f32 %v291_v3 }
  0xe0   :  { %v168_v60 = vpop.permute.xlu1 %167 }
  0xe1   :  { %v181_v9 = vmul.f32 %v629_v46, %v168_v60 }
  0xe3   :  { %v189_v16 = vadd.f32 %v181_v9, %v137_v13 }
  0xe5   :  { %v260_v4 = vpop.permute.xlu1 %259 }
  0xe6   :  { %v282_v35 = vmul.f32 %v635_v57, %v260_v4 }
  0xe7   :  { %v480_v17 = vpop.eup %479 }
  0xe8   :  { %v290_v6 = vadd.f32 %v282_v35, %v238_v5 }
  0xea   :  { %481 = vtanh.f32 %v290_v6  ;;  %v216_v7 = vpop.permute.xlu1 %215 }
  0xeb   :  { %v232_v63 = vmul.f32 %v632_v51, %v216_v7 }
  0xed   :  { %v240_v12 = vadd.f32 %v232_v63, %v188_v44 }
  0xee   :  { %v220_v11 = vpop.permute.xlu1 %219 }
  0xef   :  { %v233_v14 = vmul.f32 %v632_v51, %v220_v11  ;;  %v292_v18 = vadd.f32 %v284_v15, %v240_v12 }
  0xf1   :  { %v241_v23 = vadd.f32 %v233_v14, %v189_v16  ;;  %483 = vtanh.f32 %v292_v18 }
  0xf3   :  { %v272_v20 = vpop.permute.xlu1 %271 }
  0xf4   :  { %v482_v21 = vpop.eup %481  ;;  %v285_v24 = vmul.f32 %v635_v57, %v272_v20 }
  0xf5   :  { %v434_v25 = vpack.c.bf16 %v480_v17, %v482_v21 }
  0xf6   :  { %v293_v38 = vadd.f32 %v285_v24, %v241_v23 }
  0xf7   :  { %435 = vmatpush3.bf16.msra.mxu0 %v434_v25 }
  0xf8   :  { %485 = vtanh.f32 %v293_v38  ;;  %436 = vmatprep.subr.bf16.mxu0 %v515_v19 }
  0xfb   :  { %v484_v41 = vpop.eup %483 }
 0x102   :  { %v486_v46 = vpop.eup %485 }
 0x103   :  { %v437_v51 = vpack.c.bf16 %v486_v46, %v484_v41 }
 0x105   :  { %438 = vmatpush3.bf16.msra.mxu0 %v437_v51 }
 0x108   :  { %425 = vmatmul.mubr.msk.f32.vlgmr.msra.gmra.mrb[0].mxu0 %vm309_vm1, %v302_v26 }
 0x1db   :  { %v379_v57 = vpop.f32.mrb[0].mxu0 }
 0x1dc   :  { %v380_v28 = vadd.f32 %v379_v57, %v307_v27  ;;  %v426_v30 = vpop.f32.mrb[1].mxu0 }
 0x1de   :  { %383 = vst [vmem:[#allocation2] sm:$0x3] %v380_v28 }
 0x1df   :  { %498 = shalt.err (!%p495_p4)
}
 0x1e0   :  { %s499_s3 = scalar_lea.hbm %s693_s5, 32 }
 0x1e1   :  { %p500_p5 = scmp.ne.s32.totalorder %s693_s5, %s499_s3  ;;  %p503_p6 = scmp.lt.u32.totalorder %s499_s3, %s693_s5 }
 0x1e3   :  { %p505_p7 = pnand %p503_p6, %p500_p5 }
 0x1e5   :  { %508 = shalt.err (!%p505_p7)
}
 0x1e6   :  { %393 = dma.vmem_to_hbm [thread:$0]  %s391_s28, 32, %s693_s5, [#allocation3]  }
 0x1e7   :  { %509 = dma.done.wait [#allocation3], 32  }
 0x1e8   :  { %510 = vsyncadd [#allocation3], 4294967264 }
 0x1e9   :  { %397 = vsyncpa [#allocation3], 1 }

</bundles_post_ra>
